<compile_context>
chip_gen: v5e
topology: v5e:2x2
jax: 0.10.0
libtpu: 0.0.40
codegen_flags: <defaults>
</compile_context>

<pallas_src>
import functools
import math

import jax
import jax.numpy as jnp
from jax.experimental import pallas as pl
from jax.experimental.pallas import tpu as pltpu


def _round_up(x, m):
    return ((x + m - 1) // m) * m


def _sublane_min(dtype):
    # 8 rows for 4-byte, 16 for 2-byte, 32 for 1-byte dtypes.
    return max(8, 32 // jnp.dtype(dtype).itemsize)


def _plan(in_dim, out_dim, dtype):
    """Static tile / padding plan; depends only on (in_dim, out_dim, dtype)."""
    itemsize = jnp.dtype(dtype).itemsize
    n_pad = _round_up(out_dim, 128)
    tn = 128
    for cand in (512, 256):
        if n_pad % cand == 0:
            tn = cand
            break
    # Full-K single block for moderate in_dim (<= 2048 f32 / 4096 bf16).
    if in_dim * itemsize <= 8192:
        return {"full_k": True, "tk": in_dim, "k_pad": in_dim,
                "tn": tn, "n_pad": n_pad}
    k_pad = _round_up(in_dim, 128)
    tk = 128
    for cand in (1024, 512, 256):
        if k_pad % cand == 0:
            tk = cand
            break
    return {"full_k": False, "tk": tk, "k_pad": k_pad, "tn": tn, "n_pad": n_pad}


# ----------------------------- kernels ------------------------------------


def _proj_fullk_kernel(x_ref, w_ref, b_ref, o_ref, *, mxu_dtype):
    # x_ref: (tm, K)  w_ref: (K, tn)  b_ref: (1, tn)  o_ref: (tm, tn)
    x = x_ref[...]
    w = w_ref[...]
    if mxu_dtype is not None:
        x = x.astype(mxu_dtype)
        w = w.astype(mxu_dtype)
    acc = jnp.dot(x, w, preferred_element_type=jnp.float32)
    o_ref[...] = (acc + b_ref[...].astype(jnp.float32)).astype(o_ref.dtype)


def _proj_ktiled_f32out_kernel(x_ref, w_ref, b_ref, o_ref, *, mxu_dtype):
    # f32 output block is resident across the (innermost) K axis: accumulate
    # directly into it, no scratch, no epilogue copy.
    kk = pl.program_id(2)

    @pl.when(kk == 0)
    def _():
        o_ref[...] = jnp.zeros_like(o_ref)

    x = x_ref[...]
    w = w_ref[...]
    if mxu_dtype is not None:
        x = x.astype(mxu_dtype)
        w = w.astype(mxu_dtype)
    o_ref[...] += jnp.dot(x, w, preferred_element_type=jnp.float32)

    @pl.when(kk == pl.num_programs(2) - 1)
    def _():
        o_ref[...] += b_ref[...].astype(jnp.float32)


def _proj_ktiled_acc_kernel(x_ref, w_ref, b_ref, o_ref, acc_ref, *, mxu_dtype):
    # Non-f32 output: f32 VMEM accumulator, single cast in the finalize step.
    kk = pl.program_id(2)

    @pl.when(kk == 0)
    def _():
        acc_ref[...] = jnp.zeros_like(acc_ref)

    x = x_ref[...]
    w = w_ref[...]
    if mxu_dtype is not None:
        x = x.astype(mxu_dtype)
        w = w.astype(mxu_dtype)
    acc_ref[...] += jnp.dot(x, w, preferred_element_type=jnp.float32)

    @pl.when(kk == pl.num_programs(2) - 1)
    def _():
        o_ref[...] = (acc_ref[...] + b_ref[...].astype(jnp.float32)).astype(
            o_ref.dtype)


# ----------------------------- wrapper -------------------------------------


def simple_projection(x, weight_kn, bias, *, out_dim=None, use_bf16_mxu=False):
    """y = x @ weight_kn + bias   (== nn.Linear with weight_kn = W.T).

    weight_kn / bias may be the raw (in_dim, out_dim) / (out_dim,) params or
    the pre-padded versions from prepare_params() (preferred: avoids a
    per-call jnp.pad HBM copy of the full weight).
    """
    in_dim = x.shape[-1]
    if out_dim is None:
        out_dim = weight_kn.shape[1]
    lead_shape = x.shape[:-1]
    m = 1
    for d in lead_shape:
        m *= d

    plan = _plan(in_dim, out_dim, weight_kn.dtype)
    k_pad, n_pad, tn, tk = plan["k_pad"], plan["n_pad"], plan["tn"], plan["tk"]

    x2d = x.reshape(m, in_dim)

    # Weight / bias: use pre-padded params; pad here only as a fallback.
    if weight_kn.shape == (k_pad, n_pad):
        w2d = weight_kn
    else:
        w2d = jnp.pad(weight_kn, ((0, k_pad - in_dim), (0, n_pad - out_dim)))
    b2d = bias.reshape(1, -1)
    if b2d.shape[1] != n_pad:
        b2d = jnp.pad(b2d, ((0, 0), (0, n_pad - b2d.shape[1])))

    # M tile: dtype sublane minimum, no M padding (ragged last block is masked;
    # garbage rows never reach valid output rows).
    sub_min = _sublane_min(x.dtype)
    tm = min(512, _round_up(m, sub_min))

    gm = pl.cdiv(m, tm)
    gn = n_pad // tn
    # v7x megacore: expose >= 2 parallel (i, j) output tiles when possible.
    if gm * gn < 2:
        if gn < 2:
            for cand in (256, 128):
                if cand < tn and n_pad % cand == 0 and n_pad // cand >= 2:
                    tn = cand
                    gn = n_pad // tn
                    break
        if gm * gn < 2 and m > sub_min:
            tm_half = _round_up(pl.cdiv(m, 2), sub_min)
            if tm_half < tm:
                tm = tm_half
                gm = pl.cdiv(m, tm)

    out_dtype = x.dtype
    mxu_dtype = jnp.bfloat16 if use_bf16_mxu else None

    # Explicit VMEM budget: double-buffered tiles + optional scratch, capped
    # at 40 MiB so it also fits v7x's smaller (64 MiB) VMEM.
    tile_bytes = (tm * tk * x.dtype.itemsize
                  + tk * tn * w2d.dtype.itemsize
                  + tn * b2d.dtype.itemsize
                  + tm * tn * jnp.dtype(out_dtype).itemsize)
    scratch_bytes = (0 if (plan["full_k"] or out_dtype == jnp.float32)
                     else tm * tn * 4)
    vmem_limit = int(min(40 * 2**20,
                         max(24 * 2**20,
                             2 * tile_bytes + scratch_bytes + 4 * 2**20)))

    cost = pl.CostEstimate(
        flops=2 * m * out_dim * in_dim,
        transcendentals=0,
        bytes_accessed=(m * in_dim * x.dtype.itemsize
                        + k_pad * n_pad * w2d.dtype.itemsize
                        + n_pad * b2d.dtype.itemsize
                        + m * out_dim * jnp.dtype(out_dtype).itemsize),
    )

    if plan["full_k"]:
        out2d = pl.pallas_call(
            functools.partial(_proj_fullk_kernel, mxu_dtype=mxu_dtype),
            out_shape=jax.ShapeDtypeStruct((m, n_pad), out_dtype),
            grid_spec=pltpu.PrefetchScalarGridSpec(
                num_scalar_prefetch=0,
                grid=(gm, gn),
                in_specs=[
                    pl.BlockSpec((tm, in_dim), lambda i, j: (i, 0)),
                    pl.BlockSpec((in_dim, tn), lambda i, j: (0, j)),
                    pl.BlockSpec((1, tn), lambda i, j: (0, j)),
                ],
                out_specs=pl.BlockSpec((tm, tn), lambda i, j: (i, j)),
            ),
            compiler_params=pltpu.CompilerParams(
                dimension_semantics=("parallel", "parallel"),
                vmem_limit_bytes=vmem_limit,
            ),
            cost_estimate=cost,
        )(x2d, w2d, b2d)
    else:
        # K must stay zero-padded for correctness (garbage along K would
        # contaminate real outputs); this copies x only when in_dim % 128 != 0.
        if k_pad != in_dim:
            x2d = jnp.pad(x2d, ((0, 0), (0, k_pad - in_dim)))
        if out_dtype == jnp.float32:
            kernel = functools.partial(_proj_ktiled_f32out_kernel,
                                       mxu_dtype=mxu_dtype)
            scratch = []
        else:
            kernel = functools.partial(_proj_ktiled_acc_kernel,
                                       mxu_dtype=mxu_dtype)
            scratch = [pltpu.VMEM((tm, tn), jnp.float32)]
        out2d = pl.pallas_call(
            kernel,
            out_shape=jax.ShapeDtypeStruct((m, n_pad), out_dtype),
            grid_spec=pltpu.PrefetchScalarGridSpec(
                num_scalar_prefetch=0,
                grid=(gm, gn, k_pad // tk),
                in_specs=[
                    pl.BlockSpec((tm, tk), lambda i, j, k: (i, k)),
                    pl.BlockSpec((tk, tn), lambda i, j, k: (k, j)),
                    pl.BlockSpec((1, tn), lambda i, j, k: (0, j)),
                ],
                out_specs=pl.BlockSpec((tm, tn), lambda i, j, k: (i, j)),
                scratch_shapes=scratch,
            ),
            compiler_params=pltpu.CompilerParams(
                dimension_semantics=("parallel", "parallel", "arbitrary"),
                vmem_limit_bytes=vmem_limit,
            ),
            cost_estimate=cost,
        )(x2d, w2d, b2d)

    return out2d[:, :out_dim].reshape(*lead_shape, out_dim)


# ----------------------------- params --------------------------------------


def init_params(key, input_dim, output_dim, dtype=jnp.float32):
    """xavier_uniform_ weight stored pre-transposed as (K, N) + zero bias."""
    bound = math.sqrt(6.0 / (input_dim + output_dim))
    weight_kn = jax.random.uniform(
        key, (input_dim, output_dim), dtype=dtype, minval=-bound, maxval=bound)
    bias = jnp.zeros((output_dim,), dtype=dtype)
    return weight_kn, bias


def prepare_params(weight_kn, bias):
    """Pad the static params to the kernel's tile plan ONCE (avoids a
    per-call jnp.pad HBM copy of the full weight inside simple_projection)."""
    in_dim, out_dim = weight_kn.shape
    plan = _plan(in_dim, out_dim, weight_kn.dtype)
    k_pad, n_pad = plan["k_pad"], plan["n_pad"]
    w_p = jnp.pad(weight_kn, ((0, k_pad - in_dim), (0, n_pad - out_dim)))
    b_p = jnp.pad(bias.reshape(1, out_dim), ((0, 0), (0, n_pad - out_dim)))
    return w_p, b_p, out_dim


# ----------------------------- smoke test ----------------------------------

if __name__ == "__main__":
    key = jax.random.PRNGKey(0)
    keys = jax.random.split(key, 6)

    # 1) Small shape consistent with the module (batch, seq, input_dim).
    batch, seq, input_dim, output_dim = 2, 8, 32, 64
    x = jax.random.normal(keys[0], (batch, seq, input_dim), dtype=jnp.float32)
    w, b = init_params(keys[1], input_dim, output_dim)
    w_p, b_p, od = prepare_params(w, b)          # pre-padded static params
    out = jax.block_until_ready(simple_projection(x, w_p, b_p, out_dim=od))
    ref = x @ w + b
    assert out.shape == (batch, seq, output_dim)
    assert jnp.allclose(out, ref, atol=1e-2, rtol=1e-2)

    # 2) Larger, 128-aligned shapes (full-K path, multi-tile (i, j) grid),
    #    raw (unpadded) params to exercise the fallback path.
    b2, s2, d_in2, d_out2 = 4, 128, 256, 384
    x2 = jax.random.normal(keys[2], (b2, s2, d_in2), dtype=jnp.float32)
    w2, bias2 = init_params(keys[3], d_in2, d_out2)
    out2 = jax.block_until_ready(simple_projection(x2, w2, bias2))
    ref2 = x2 @ w2 + bias2
    assert out2.shape == (b2, s2, d_out2)
    assert jnp.allclose(out2, ref2, atol=1e-2, rtol=1e-2)

    # 3) Large-K shape to exercise the K-tiled, resident-f32-output path.
    b3, s3, d_in3, d_out3 = 2, 96, 2560, 512
    x3 = jax.random.normal(keys[4], (b3, s3, d_in3), dtype=jnp.float32)
    w3, bias3 = init_params(keys[5], d_in3, d_out3)
    w3_p, b3_p, od3 = prepare_params(w3, bias3)
    out3 = jax.block_until_ready(simple_projection(x3, w3_p, b3_p, out_dim=od3))
    ref3 = x3 @ w3 + bias3
    assert out3.shape == (b3, s3, d_out3)
    assert jnp.allclose(out3, ref3, atol=2e-2, rtol=2e-2)

    print("KERNEL_OK")
</pallas_src>

<mosaic_0001>
module attributes {stable_mosaic.version = 11 : i64} {
  func.func @_proj_fullk_kernel(%arg0: i32, %arg1: i32, %arg2: memref<8x32xf32, #tpu.memory_space<vmem>>, %arg3: memref<32x128xf32, #tpu.memory_space<vmem>>, %arg4: memref<1x128xf32, #tpu.memory_space<vmem>>, %arg5: memref<8x128xf32, #tpu.memory_space<vmem>>) attributes {dimension_semantics = [#tpu.dimension_semantics<parallel>, #tpu.dimension_semantics<parallel>], iteration_bounds = array<i64: 2, 1>, scalar_prefetch = 0 : i64, scratch_operands = 0 : i64, tpu.core_type = #tpu.core_type<tc>, window_params = [{transform_indices = @transform_0, window_bounds = array<i64: 8, 32>}, {transform_indices = @transform_1, window_bounds = array<i64: 32, 128>}, {transform_indices = @transform_2, window_bounds = array<i64: 1, 128>}, {transform_indices = @transform_3, window_bounds = array<i64: 8, 128>}]} {
    %c0 = arith.constant 0 : index
    %c0_0 = arith.constant 0 : index
    %0 = vector.load %arg2[%c0, %c0_0] : memref<8x32xf32, #tpu.memory_space<vmem>>, vector<8x32xf32>
    %c0_1 = arith.constant 0 : index
    %c0_2 = arith.constant 0 : index
    %1 = vector.load %arg3[%c0_1, %c0_2] : memref<32x128xf32, #tpu.memory_space<vmem>>, vector<32x128xf32>
    %cst = arith.constant dense<0.000000e+00> : vector<8x128xf32>
    %2 = tpu.matmul %0, %1, %cst {dimension_numbers = #tpu.dot_dimension_numbers<[1], [0], [0], [1], [0, 0, 1, 1], [], []>} : vector<8x32xf32>, vector<32x128xf32>, vector<8x128xf32> -> vector<8x128xf32>
    %c0_3 = arith.constant 0 : index
    %c0_4 = arith.constant 0 : index
    %3 = vector.load %arg4[%c0_3, %c0_4] : memref<1x128xf32, #tpu.memory_space<vmem>>, vector<1x128xf32>
    %4 = vector.broadcast %3 : vector<1x128xf32> to vector<8x128xf32>
    %5 = arith.addf %2, %4 : vector<8x128xf32>
    %c0_5 = arith.constant 0 : index
    %c0_6 = arith.constant 0 : index
    %6 = vector.load %arg5[%c0_5, %c0_6] : memref<8x128xf32, #tpu.memory_space<vmem>>, vector<8x128xf32>
    tpu.vector_store %arg5[%c0_5, %c0_6], %5 {strides = array<i32>} : memref<8x128xf32, #tpu.memory_space<vmem>>, vector<8x128xf32>,
    return
  }
  func.func @transform_0(%arg0: i32, %arg1: i32) -> (i32, i32) {
    %c0_i32 = arith.constant 0 : i32
    %c0_i32_0 = arith.constant 0 : i32
    return %arg0, %c0_i32 : i32, i32
  }
  func.func @transform_1(%arg0: i32, %arg1: i32) -> (i32, i32) {
    %c0_i32 = arith.constant 0 : i32
    %c0_i32_0 = arith.constant 0 : i32
    return %c0_i32, %arg1 : i32, i32
  }
  func.func @transform_2(%arg0: i32, %arg1: i32) -> (i32, i32) {
    %c0_i32 = arith.constant 0 : i32
    %c0_i32_0 = arith.constant 0 : i32
    return %c0_i32, %arg1 : i32, i32
  }
  func.func @transform_3(%arg0: i32, %arg1: i32) -> (i32, i32) {
    %c0_i32 = arith.constant 0 : i32
    return %arg0, %arg1 : i32, i32
  }
}

</mosaic_0001>

<bundles_post_ra>
// kernel: tpu_custom_call.1
= control target key start
LH: loop header
LB: loop body
LE: loop exit
PB: predicated region body
PF: predicated region fallthrough
CT: control target
= control target key end

     0   :  { %8 = vsyncpa [#allocation3], 0  ;;  %s804_s0 = inlined_call_operand.hbm [shape: f32[16,32], index: 0, kind: input, shape index: {}]   ;;  %s805_s1 = inlined_call_operand.hbm [shape: f32[32,128], index: 1, kind: input, shape index: {}]   ;;  %s806_s2 = inlined_call_operand.vmem [shape: f32[1,128], index: 2, kind: input, shape index: {}]   ;;  %s807_s3 = inlined_call_operand.hbm [shape: f32[16,128], index: 3, kind: output, shape index: {}]  }
   0x1   :  { %10 = vsyncpa [#allocation3 + $0x1], 0 }
   0x2   :  { %11 = vsyncpa [#allocation6], 0 }
   0x3   :  { %12 = vsyncpa [#allocation4], 0 }
   0x4   :  { %14 = vsyncpa [#allocation4 + $0x1], 0  ;;  %s658_s12 = smov 0   ;;  %s660_s13 = smov 0  }
   0x5   :  { %s662_s14 = smov 0   ;;  %s664_s15 = smov 0  }
   0x6   :  { %s666_s16 = smov 0   ;;  %s668_s17 = smov 0  }
   0x7 LB: > { %s394_s18 = sadd.s32 4294967295, %s633_s17   ;;  %p396_p0 = scmp.ge.s32.totalorder %s633_s17, 1  ;;  %s633_s17 = sphi %s668_s17, %s20_s17   ;;  %s629_s16 = sphi %s666_s16, %s818_s16   ;;  %s625_s15 = sphi %s664_s15, %s817_s15   ;;  %s621_s14 = sphi %s662_s14, %s816_s14   ;;  %s617_s13 = sphi %s660_s13, %s815_s13   ;;  %s613_s12 = sphi %s658_s12, %s814_s12  }
   0x8   : > { %p690_p1 = scmp.eq.s32.totalorder %s394_s18, 0  ;;  %p143_p2 = scmp.lt.s32.totalorder %s633_s17, 3 }
   0x9   : > { %s156_s22 = sshll.u32 %s805_s1, 4  ;;  %s635_s24 = smov [#allocation5]   ;;  %s157_s22 = int_to_ptr.hbm [resolvable:$true] %s156_s22 }
   0xa   : > { %p698_p3 = pnand %p396_p0, %p143_p2  ;;  %s158_s25 = sshll.u32 %s635_s24, 4  ;;  %s159_s25 = int_to_ptr.vmem [resolvable:$true] %s158_s25 }
   0xb   : > { %p399_p6 = scmp.ge.s32.totalorder %s633_s17, 2  ;;  %s636_s26 = smov 128  }
   0xc   : > { %p419_p4 = pneg %p698_p3  ;;  %s637_s27 = smov 8  }
   0xd   : > { %s395_s28 = sadd.s32 4294967294, %s633_s17   ;;  %s32_s29 = sadd.s32 1, %s629_s16 }
   0xe   : > { %p420_p5 = pnand %p419_p4, %p690_p1  ;;  %s39_s30 = sadd.s32 1, %s621_s14 }
   0xf   : > { %p34_p7 = scmp.ge.s32.totalorder %s32_s29, 2  ;;  %p46_p8 = scmp.ne.s32.totalorder %s621_s14, %s617_s13 }
  0x10   : > { %422 = dma.hbm_to_vmem [thread:$0]  (!%p420_p5), %s157_s22, 512, %s159_s25, [#allocation6], %s636_s26, %s636_s26, %s637_s27  }
  0x11   : > { %p47_p9 = scmp.eq.s32.totalorder %s633_s17, 0  ;;  %p52_p10 = scmp.ne.s32.totalorder %s617_s13, %s613_s12 }
  0x12   : > { %s820_s29 = smov (%p34_p7, %s32_s29), 0  ;;  %p130_p13 = scmp.eq.s32.totalorder %s394_s18, 1 }
  0x13   : > { %p717_p11 = por %p47_p9, %p46_p8  ;;  %p723_p12 = por %p690_p1, %p52_p10 }
  0x14   : > { %s36_s6 = ssub.s32 %s629_s16, %s820_s29  ;;  %p136_p2 = scmp.eq.s32.totalorder %s395_s28, 1 }
  0x15   : > { %p37_p0 = scmp.eq.s32.totalorder %s36_s6, 0  ;;  %p729_p4 = por %p130_p13, %p46_p8 }
  0x16   : > { %p432_p5 = scmp.lt.s32.totalorder %s633_s17, 2  ;;  %p737_p7 = por %p136_p2, %p52_p10 }
  0x17   : > { %s735_s8 = scalar_select %p37_p0, %s621_s14, %s39_s30  }
  0x18   : > { %s178_s10 = sand.u32 1, %s621_s14   ;;  %s401_s20 = sshll.u32 %s629_s16, 3 }
  0x19   : > { %s400_s11 = sshll.u32 %s178_s10, 3  ;;  %s186_s18 = scalar_lea.hbm %s804_s0, %s401_s20 }
  0x1a   : > { %s182_s24 = scalar_lea.vmem [#allocation2], %s400_s11  ;;  %s188_s26 = sshll.u32 %s186_s18, 4  ;;  %s189_s26 = int_to_ptr.hbm [resolvable:$true] %s188_s26 }
  0x1b   : > { %s190_s25 = sshll.u32 %s182_s24, 4  ;;  %p424_p8 = pnand %p432_p5, %p717_p11  ;;  %s191_s25 = int_to_ptr.vmem [resolvable:$true] %s190_s25 }
  0x1c   : > { %s179_s27 = scalar_lea.sflag [#allocation3], %s178_s10  ;;  %199 = sbr.rel (%p698_p3) target bundleno = 175 (0xaf), region = 32 }
  0x1d   : > { %426 = dma.hbm_to_vmem [thread:$0]  (!%p424_p8), %s189_s26, 128, %s191_s25, %s179_s27  }
  0x1e   : > { %s751_s28 = sand.u32 (!%p698_p3), 1, %s617_s13  }
  0x1f   : > { %s403_s30 = sshll.u32 (!%p698_p3), %s751_s28, 3  ;;  %s202_s6 = scalar_lea.sflag (!%p698_p3), [#allocation3], %s751_s28 }
  0x20   : > { %s205_s11 = scalar_lea.vmem (!%p698_p3), [#allocation2], %s403_s30 }
  0x21   : > { %600 = dma.done.wait (%p723_p12), %s202_s6, 128  }
  0x22   : > { %602 = vsyncadd (%p723_p12), %s202_s6, 4294967168 }
  0x23   : > { %604 = dma.done.wait (%p690_p1), [#allocation6], 512  }
  0x24   : > { %606 = vsyncadd (%p690_p1), [#allocation6], 4294966784  ;;  %v244_v0 = vld [vmem:[#allocation5 + $0x18] sm:$0xff]  ;;  %v243_v1 = vld [vmem:[#allocation5 + $0x10] sm:$0xff]  ;;  %vm249_vm0 = vcmask 261120   ;;  %s408_s23 = sshll.u32 %s625_s15, 3 }
  0x25   : > { %265 = vmatpush.msra.mxu0 %v244_v0  ;;  %v242_v2 = vld [vmem:[#allocation5 + $0x8] sm:$0xff]  ;;  %v241_v3 = vld [vmem:[#allocation5] sm:$0xff]  ;;  %v240_v4 = vld [vmem:[%s205_s11] sm:$0xff]  ;;  %s286_s19 = scalar_lea.hbm %s807_s3, %s408_s23  ;;  %s236_s21 = scalar_lea.vmem [#allocation7], %s403_s30 }
  0x26   : > { %v486_v5 = vld [vmem:[%s806_s2] ss:$0 sm:$0xff]  ;;  %s288_s22 = sshll.u32 %s236_s21, 4  ;;  %s290_s18 = sshll.u32 %s286_s19, 4  ;;  %s289_s22 = int_to_ptr.vmem [resolvable:$true] %s288_s22  ;;  %s291_s18 = int_to_ptr.hbm [resolvable:$true] %s290_s18 }
  0x27   : > { %266 = vmatpush.msra.mxu0 %v243_v1  ;;  %s275_s24 = scalar_lea.sflag [#allocation4], %s751_s28  ;;  %s561_s25 = sshra.s32 %s291_s18, 4  ;;  %s562_s25 = int_to_ptr.hbm [resolvable:$true] %s561_s25 }
  0x28   : > { %s563_s15 = scalar_lea.hbm %s562_s25, 8  ;;  %s567_s6 = scalar_lea.hbm %s807_s3, 16 }
  0x29   : > { %267 = vmatpush.msra.mxu0 %v242_v2  ;;  %p564_p1 = scmp.ne.s32.totalorder %s562_s25, %s563_s15  ;;  %p568_p10 = scmp.lt.s32.totalorder %s562_s25, %s807_s3 }
  0x2a   : > { %p569_p11 = scmp.lt.s32.totalorder %s567_s6, %s563_s15 }
  0x2b   : > { %268 = vmatpush.msra.mxu0 %v241_v3  ;;  %p565_p3 = pnand %p564_p1, %p729_p4 }
  0x2c   : > { %406 = vmatmul.msk.f32.vlgmr.msra.gmra.mxu0 %vm249_vm0, %v240_v4  ;;  %p570_p12 = por %p569_p11, %p568_p10 }
  0x2d   : > { %p566_p9 = pneg %p565_p3 }
  0x2f   : > { %p571_p13 = pnand %p570_p12, %p566_p9 }
  0xa9   : > { %v270_v6 = vpop.f32.mrf.mxu0 }
  0xaa   : > { %v271_v7 = vadd.f32 %v486_v5, %v270_v6 }
  0xac   : > { %273 = vst [vmem:[%s236_s21] sm:$0xff] %v271_v7 }
  0xad   : > { %574 = shalt.err (!%p571_p13)
}
  0xae   : > { %417 = dma.vmem_to_hbm [thread:$0]  (%p729_p4), %s289_s22, 128, %s291_s18, %s275_s24  }
  0xaf PF: > { %s302_s28 = sand.u32 1, %s613_s12   ;;  %p428_p0 = pnand %p399_p6, %p737_p7 }
  0xb0   : > { %s303_s23 = scalar_lea.sflag [#allocation4], %s302_s28 }
  0xb1   : > { %p429_p2 = pneg %p428_p0 }
  0xb3   : > { %608 = dma.done.wait (%p429_p2), %s303_s23, 128  }
  0xb4   : > { %610 = vsyncadd (%p429_p2), %s303_s23, 4294967168  ;;  %s20_s17 = sadd.s32 1, %s633_s17   ;;  %s814_s12 = smov %s617_s13 }
  0xb5   : > { %p17_p5 = scmp.ge.s32.totalorder %s20_s17, 4   ;;  %s815_s13 = smov %s621_s14 }
  0xb6   : > { %s816_s14 = smov %s735_s8  ;;  %s817_s15 = smov %s629_s16 }
  0xb7   : > { %s818_s16 = smov %s820_s29  ;;  %19 = sbr.rel (!%p17_p5) target bundleno = 7 (0x7), region = 85 }
  0xbc   :  { %309 = vsyncpa [#allocation3], 1 }
  0xbd   :  { %311 = vsyncpa [#allocation3 + $0x1], 1 }
  0xbe   :  { %312 = vsyncpa [#allocation6], 1 }
  0xbf   :  { %313 = vsyncpa [#allocation4], 1 }
  0xc0   :  { %315 = vsyncpa [#allocation4 + $0x1], 1 }

</bundles_post_ra>
